<compile_context>
chip_gen: v6e
topology: v6e:2x2x1
jax: 0.10.0
libtpu: 0.0.40
codegen_flags: <defaults>
</compile_context>

<pallas_src>
import functools
import math

import jax
import jax.numpy as jnp
from jax import lax
from jax.experimental import pallas as pl
from jax.experimental.pallas import tpu as pltpu

# constants.EPSILON from the original repo (small stabilizer).
EPSILON = 1e-8


def _gauss_kld_kernel(hm_ref, par_ref, coord_ref, out_ref, *, bn, tile):
    hm = hm_ref[...].astype(jnp.float32)    # (T, HW) target probability heatmaps
    par = par_ref[...]                      # (T, 8)  polynomial coefficients
    coords = coord_ref[...]                 # (8, HW) [x*x, x*y, y*y, x, y, 1, 0, 0]

    # log of the unnormalized Gaussian on the MXU (prefactor cancels in the
    # normalization).  HIGHEST precision keeps f32-level accuracy for the
    # quadratic terms (x^2 up to ~4e3 would lose too much in bf16 passes).
    log_prob = jnp.dot(par, coords,
                       preferred_element_type=jnp.float32,
                       precision=lax.Precision.HIGHEST)      # (T, HW)
    p = jnp.exp(log_prob)                                     # (T, HW)
    s = jnp.sum(p, axis=1, keepdims=True)                     # (T, 1) row sums

    # KLDivLoss(reduce=False)(log(p/S + eps), hm) summed over pixels, with the
    # exact rewrite  log(p/S + eps) = log(p + eps*S) - log(S):
    #   row_loss = sum(hm*(log(hm) - log(p + eps*S))) + sum(hm)*log(S)
    # (hm == 0 pixels contribute exactly 0 via safe_hm = 1).
    safe_hm = jnp.where(hm > 0.0, hm, 1.0)
    kld = hm * (jnp.log(safe_hm) - jnp.log(p + EPSILON * s))
    row_loss = (jnp.sum(kld, axis=1, keepdims=True)
                + jnp.sum(hm, axis=1, keepdims=True) * jnp.log(s))   # (T, 1)

    # Mask rows beyond BN in the (possibly partial) last block with a select so
    # garbage/NaN from unread buffer rows can never propagate.
    row_ids = (pl.program_id(0) * tile
               + lax.broadcasted_iota(jnp.int32, row_loss.shape, 0))
    out_ref[...] = jnp.where(row_ids < bn, row_loss, 0.0)


def _pick_row_tile(bn, hw):
    """Row tile so one heatmap block is ~2 MiB (good HBM pipelining, safe inside
    v7x's 64 MiB VMEM), capped so the grid has >= 2 steps when possible."""
    bytes_per_row = max(hw * 4, 1)
    tile = (2 * 1024 * 1024) // bytes_per_row
    tile = max(8, min(512, (tile // 8) * 8))
    # Never bigger than the (8-rounded) problem.
    tile = min(tile, ((bn + 7) // 8) * 8)
    # Prefer >= 2 grid steps so both v7x TensorCores get work and the DMA
    # pipeline has something to overlap with.
    if bn > 16:
        half = ((((bn + 1) // 2) + 7) // 8) * 8
        tile = min(tile, half)
    return max(8, tile)


def gaussian_regularization_loss(heatmaps, means, covariance, measure="kld"):
    """JAX/Pallas equivalent of GaussianRegularizationLoss.forward.

    heatmaps:   (B, N, H, W) probability heatmaps (each map sums to 1)
    means:      (B, N, 2)    (x, y) means in pixel coordinates
    covariance: (B, N, 4)    row-major 2x2 covariance per point
    """
    if measure == "nothing":
        return jnp.zeros((1,), jnp.float32)
    # TODO(synk): only the 'kld' measure is implemented; 'kld_swap',
    # 'hellinger', 'l1', 'l2' would reuse the same Gaussian kernel body with a
    # different per-row reduction, and is_covariance=False (Cholesky) is TODO
    # in the original module as well.
    assert measure == "kld"

    B, N, H, W = heatmaps.shape
    BN, HW = B * N, H * W

    # Accept bf16 heatmaps as-is (upcast inside the kernel); everything else f32.
    if heatmaps.dtype == jnp.bfloat16:
        hm = heatmaps.reshape(BN, HW)
    else:
        hm = heatmaps.reshape(BN, HW).astype(jnp.float32)
    mn = means.reshape(BN, 2).astype(jnp.float32)
    cv = covariance.reshape(BN, 4).astype(jnp.float32)

    # Per-row Gaussian polynomial coefficients (tiny: done in the wrapper).
    s00, s01, s10, s11 = cv[:, 0], cv[:, 1], cv[:, 2], cv[:, 3]
    det = s00 * s11 - s01 * s10 + EPSILON
    inv_det = 1.0 / det
    a = -0.5 * s11 * inv_det                 # coefficient of x^2
    b = 0.5 * (s01 + s10) * inv_det          # coefficient of x*y
    c = -0.5 * s00 * inv_det                 # coefficient of y^2
    mu_x, mu_y = mn[:, 0], mn[:, 1]
    d = -(2.0 * a * mu_x + b * mu_y)         # coefficient of x
    e = -(2.0 * c * mu_y + b * mu_x)         # coefficient of y
    f = a * mu_x * mu_x + b * mu_x * mu_y + c * mu_y * mu_y   # constant
    zeros = jnp.zeros_like(a)
    params = jnp.stack([a, b, c, d, e, f, zeros, zeros], axis=-1)   # (BN, 8)

    # generate_grid(height, width): xv = column index, yv = row index.
    xs = jnp.arange(W, dtype=jnp.float32)
    ys = jnp.arange(H, dtype=jnp.float32)
    xv = jnp.tile(xs[None, :], (H, 1)).reshape(HW)
    yv = jnp.tile(ys[:, None], (1, W)).reshape(HW)
    ones = jnp.ones((HW,), jnp.float32)
    zrow = jnp.zeros((HW,), jnp.float32)
    coords = jnp.stack([xv * xv, xv * yv, yv * yv, xv, yv, ones, zrow, zrow],
                       axis=0)                                      # (8, HW)

    tile = _pick_row_tile(BN, HW)
    grid = (pl.cdiv(BN, tile),)

    # VMEM budget from the actual per-step footprint: double-buffered hm block,
    # coords/params/out buffers, ~5 block-sized f32 temporaries, plus slack.
    block_bytes = tile * HW * 4
    vmem_bytes = (2 * block_bytes                 # hm double buffer
                  + 2 * 8 * HW * 4                # coords
                  + 2 * tile * 8 * 4              # params
                  + 2 * tile * 128 * 4            # (tile, 1) out, lane-padded
                  + 5 * block_bytes               # elementwise temporaries
                  + (2 << 20))
    vmem_bytes = int(min(64 * 1024 * 1024, max(32 * 1024 * 1024, vmem_bytes)))

    kernel = functools.partial(_gauss_kld_kernel, bn=BN, tile=tile)
    row_losses = pl.pallas_call(
        kernel,
        out_shape=jax.ShapeDtypeStruct((BN, 1), jnp.float32),
        grid_spec=pltpu.PrefetchScalarGridSpec(
            num_scalar_prefetch=0,
            grid=grid,
            in_specs=[
                pl.BlockSpec((tile, HW), lambda i: (i, 0)),   # heatmaps
                pl.BlockSpec((tile, 8), lambda i: (i, 0)),    # per-row params
                pl.BlockSpec((8, HW), lambda i: (0, 0)),      # pixel polynomial basis
            ],
            out_specs=pl.BlockSpec((tile, 1), lambda i: (i, 0)),
        ),
        compiler_params=pltpu.CompilerParams(
            dimension_semantics=("parallel",),
            vmem_limit_bytes=vmem_bytes,
        ),
    )(hm, params, coords)

    return jnp.mean(row_losses)


def _reference_loss(heatmaps, means, covariance):
    """Pure-JAX reference mirroring the PyTorch forward (measure='kld')."""
    B, N, H, W = heatmaps.shape
    hm = heatmaps.reshape(B * N, H * W).astype(jnp.float32)
    mn = means.reshape(B * N, 2).astype(jnp.float32)
    cv = covariance.reshape(B * N, 4).astype(jnp.float32)
    xs = jnp.arange(W, dtype=jnp.float32)
    ys = jnp.arange(H, dtype=jnp.float32)
    xv = jnp.tile(xs[None, :], (H, 1)).reshape(1, H * W)
    yv = jnp.tile(ys[:, None], (1, W)).reshape(1, H * W)
    s00, s01, s10, s11 = cv[:, 0:1], cv[:, 1:2], cv[:, 2:3], cv[:, 3:4]
    det = s00 * s11 - s01 * s10 + EPSILON
    i00, i11 = s11 / det, s00 / det
    i01, i10 = -s01 / det, -s10 / det
    dx = xv - mn[:, 0:1]
    dy = yv - mn[:, 1:2]
    quad = i00 * dx * dx + (i01 + i10) * dx * dy + i11 * dy * dy
    prob = jnp.exp(-0.5 * quad) / (2.0 * math.pi * jnp.sqrt(det))
    prob = prob / jnp.sum(prob, axis=1, keepdims=True)
    log_input = jnp.log(prob + EPSILON)
    tlogt = jnp.where(hm > 0.0, hm * jnp.log(jnp.where(hm > 0.0, hm, 1.0)), 0.0)
    kld = tlogt - hm * log_input
    return jnp.mean(jnp.sum(kld, axis=1))


if __name__ == "__main__":
    key = jax.random.PRNGKey(0)
    B, N, H, W = 2, 4, 16, 16   # small shapes; module nominally uses 68 x 64 x 64

    k1, k2, k3, k4, k5 = jax.random.split(key, 5)

    # Probability heatmaps (softmax over pixels so each map sums to 1).
    logits = jax.random.normal(k1, (B, N, H * W), dtype=jnp.float32)
    heatmaps = jax.nn.softmax(logits, axis=-1).reshape(B, N, H, W)

    # Means in pixel coordinates within [2, H-3].
    means = 2.0 + jax.random.uniform(k2, (B, N, 2), dtype=jnp.float32) * (H - 5)

    # Symmetric positive-definite 2x2 covariances, flattened row-major to 4.
    a = 2.0 + jax.random.uniform(k3, (B, N), dtype=jnp.float32) * 2.0
    b = 2.0 + jax.random.uniform(k4, (B, N), dtype=jnp.float32) * 2.0
    c = 0.3 * jax.random.normal(k5, (B, N), dtype=jnp.float32)
    covariance = jnp.stack([a, c, c, b], axis=-1)  # (B, N, 4)

    loss = gaussian_regularization_loss(heatmaps, means, covariance, measure="kld")
    loss = jax.block_until_ready(loss)

    ref = _reference_loss(heatmaps, means, covariance)
    assert jnp.isfinite(loss), "loss is not finite"
    assert jnp.allclose(loss, ref, rtol=1e-3, atol=1e-5), (loss, ref)

    print("KERNEL_OK")
</pallas_src>

<mosaic_0001>
module attributes {stable_mosaic.version = 11 : i64} {
  func.func @_gauss_kld_kernel(%arg0: i32, %arg1: memref<8x256xf32, #tpu.memory_space<vmem>>, %arg2: memref<8x8xf32, #tpu.memory_space<vmem>>, %arg3: memref<8x256xf32, #tpu.memory_space<vmem>>, %arg4: memref<8x1xf32, #tpu.memory_space<vmem>>) attributes {dimension_semantics = [#tpu.dimension_semantics<parallel>], iteration_bounds = array<i64: 1>, scalar_prefetch = 0 : i64, scratch_operands = 0 : i64, tpu.core_type = #tpu.core_type<tc>, window_params = [{transform_indices = @transform_0, window_bounds = array<i64: 8, 256>}, {transform_indices = @transform_1, window_bounds = array<i64: 8, 8>}, {pipeline_mode = #tpu.pipeline_mode<synchronous>, transform_indices = @transform_2, window_bounds = array<i64: 8, 256>}, {transform_indices = @transform_3, window_bounds = array<i64: 8, 1>}]} {
    %c0 = arith.constant 0 : index
    %c0_0 = arith.constant 0 : index
    %0 = vector.load %arg1[%c0, %c0_0] : memref<8x256xf32, #tpu.memory_space<vmem>>, vector<8x256xf32>
    %c0_1 = arith.constant 0 : index
    %c0_2 = arith.constant 0 : index
    %1 = vector.load %arg2[%c0_1, %c0_2] : memref<8x8xf32, #tpu.memory_space<vmem>>, vector<8x8xf32>
    %c0_3 = arith.constant 0 : index
    %c0_4 = arith.constant 0 : index
    %2 = vector.load %arg3[%c0_3, %c0_4] : memref<8x256xf32, #tpu.memory_space<vmem>>, vector<8x256xf32>
    %cst = arith.constant dense<0.000000e+00> : vector<8x256xf32>
    %3 = tpu.matmul %1, %2, %cst {dimension_numbers = #tpu.dot_dimension_numbers<[1], [0], [0], [1], [0, 0, 1, 1], [], []>, precision = #tpu.contract_precision<fp32>} : vector<8x8xf32>, vector<8x256xf32>, vector<8x256xf32> -> vector<8x256xf32>
    %4 = math.exp %3 : vector<8x256xf32>
    %cst_5 = arith.constant dense<0.000000e+00> : vector<8xf32>
    %5 = vector.multi_reduction <add>, %4, %cst_5 [1] : vector<8x256xf32> to vector<8xf32>
    %6 = vector.shape_cast %5 : vector<8xf32> to vector<8x1xf32>
    %cst_6 = arith.constant 0.000000e+00 : f32
    %7 = vector.broadcast %cst_6 : f32 to vector<8x256xf32>
    %8 = arith.cmpf ogt, %0, %7 : vector<8x256xf32>
    %cst_7 = arith.constant 1.000000e+00 : f32
    %9 = vector.broadcast %cst_7 : f32 to vector<8x256xf32>
    %10 = arith.select %8, %0, %9 : vector<8x256xi1>, vector<8x256xf32>
    %11 = math.log %10 : vector<8x256xf32>
    %cst_8 = arith.constant 9.99999993E-9 : f32
    %12 = vector.broadcast %cst_8 : f32 to vector<8x1xf32>
    %13 = arith.mulf %12, %6 : vector<8x1xf32>
    %14 = vector.broadcast %13 : vector<8x1xf32> to vector<8x256xf32>
    %15 = arith.addf %4, %14 : vector<8x256xf32>
    %16 = math.log %15 : vector<8x256xf32>
    %17 = arith.subf %11, %16 : vector<8x256xf32>
    %18 = arith.mulf %0, %17 : vector<8x256xf32>
    %cst_9 = arith.constant dense<0.000000e+00> : vector<8xf32>
    %19 = vector.multi_reduction <add>, %18, %cst_9 [1] : vector<8x256xf32> to vector<8xf32>
    %20 = vector.shape_cast %19 : vector<8xf32> to vector<8x1xf32>
    %cst_10 = arith.constant dense<0.000000e+00> : vector<8xf32>
    %21 = vector.multi_reduction <add>, %0, %cst_10 [1] : vector<8x256xf32> to vector<8xf32>
    %22 = vector.shape_cast %21 : vector<8xf32> to vector<8x1xf32>
    %23 = math.log %6 : vector<8x1xf32>
    %24 = arith.mulf %22, %23 : vector<8x1xf32>
    %25 = arith.addf %20, %24 : vector<8x1xf32>
    %c8_i32 = arith.constant 8 : i32
    %26 = arith.muli %arg0, %c8_i32 : i32
    %27 = tpu.iota {dimensions = array<i32: 0>} : vector<8x1xi32>
    %28 = vector.broadcast %26 : i32 to vector<8x1xi32>
    %29 = arith.addi %28, %27 : vector<8x1xi32>
    %c8_i32_11 = arith.constant 8 : i32
    %30 = vector.broadcast %c8_i32_11 : i32 to vector<8x1xi32>
    %31 = arith.cmpi slt, %29, %30 : vector<8x1xi32>
    %cst_12 = arith.constant 0.000000e+00 : f32
    %32 = vector.broadcast %cst_12 : f32 to vector<8x1xf32>
    %33 = arith.select %31, %25, %32 : vector<8x1xi1>, vector<8x1xf32>
    %c0_13 = arith.constant 0 : index
    %c0_14 = arith.constant 0 : index
    %34 = vector.load %arg4[%c0_13, %c0_14] : memref<8x1xf32, #tpu.memory_space<vmem>>, vector<8x1xf32>
    tpu.vector_store %arg4[%c0_13, %c0_14], %33 {strides = array<i32>} : memref<8x1xf32, #tpu.memory_space<vmem>>, vector<8x1xf32>,
    return
  }
  func.func @transform_0(%arg0: i32) -> (i32, i32) {
    %c0_i32 = arith.constant 0 : i32
    %c0_i32_0 = arith.constant 0 : i32
    return %arg0, %c0_i32 : i32, i32
  }
  func.func @transform_1(%arg0: i32) -> (i32, i32) {
    %c0_i32 = arith.constant 0 : i32
    %c0_i32_0 = arith.constant 0 : i32
    return %arg0, %c0_i32 : i32, i32
  }
  func.func @transform_2(%arg0: i32) -> (i32, i32) {
    %c0_i32 = arith.constant 0 : i32
    %c0_i32_0 = arith.constant 0 : i32
    %c0_i32_1 = arith.constant 0 : i32
    return %c0_i32, %c0_i32_0 : i32, i32
  }
  func.func @transform_3(%arg0: i32) -> (i32, i32) {
    %c0_i32 = arith.constant 0 : i32
    %c0_i32_0 = arith.constant 0 : i32
    return %arg0, %c0_i32 : i32, i32
  }
}

</mosaic_0001>

<bundles_post_ra>
// kernel: tpu_custom_call.1
= control target key start
LH: loop header
LB: loop body
LE: loop exit
PB: predicated region body
PF: predicated region fallthrough
CT: control target
= control target key end

     0   :  { %8 = vsyncpa [#allocation3], 0  ;;  %s692_s0 = inlined_call_operand.hbm [shape: f32[8,256], index: 0, kind: input, shape index: {}]   ;;  %s693_s1 = inlined_call_operand.hbm [shape: f32[8,8], index: 1, kind: input, shape index: {}]   ;;  %s694_s2 = inlined_call_operand.hbm [shape: f32[8,256], index: 2, kind: input, shape index: {}]   ;;  %s695_s3 = inlined_call_operand.vmem [shape: f32[8,1], index: 3, kind: output, shape index: {}]  }
   0x1   :  { %9 = vsyncpa [#allocation5], 0  ;;  %s656_s12 = smov [#allocation4]   ;;  %s657_s14 = smov [#allocation2]  }
   0x2   :  { %s26_s13 = sshll.u32 %s656_s12, 4  ;;  %s16_s15 = sshll.u32 %s657_s14, 4  ;;  %s27_s13 = int_to_ptr.vmem [resolvable:$true] %s26_s13  ;;  %s17_s15 = int_to_ptr.vmem [resolvable:$true] %s16_s15 }
   0x3   :  { %s600_s16 = scalar_lea.vmem %s27_s13, 128  ;;  %p605_p1 = scmp.lt.s32.totalorder %s27_s13, %s27_s13 }
   0x4   :  { %p601_p0 = scmp.ne.s32.totalorder %s27_s13, %s600_s16  ;;  %p606_p2 = scmp.lt.s32.totalorder %s600_s16, %s600_s16 }
   0x6   :  { %p607_p3 = por %p606_p2, %p605_p1 }
   0x8   :  { %p608_p4 = pnand %p607_p3, %p601_p0 }
   0xa   :  { %611 = shalt.err (!%p608_p4)
}
   0xb   :  { %29 = dma.hbm_to_vmem [thread:$0]  %s693_s1, 128, %s27_s13, [#allocation5]  }
   0xc   :  { %s620_s19 = scalar_lea.vmem %s17_s15, 256  ;;  %p625_p6 = scmp.lt.s32.totalorder %s17_s15, %s17_s15 }
   0xd   :  { %p621_p5 = scmp.ne.s32.totalorder %s17_s15, %s620_s19  ;;  %p626_p7 = scmp.lt.s32.totalorder %s620_s19, %s620_s19 }
   0xf   :  { %p627_p8 = por %p626_p7, %p625_p6 }
  0x11   :  { %p628_p9 = pnand %p627_p8, %p621_p5 }
  0x13   :  { %631 = shalt.err (!%p628_p9)
}
  0x14   :  { %19 = dma.hbm_to_vmem [thread:$0]  %s692_s0, 256, %s17_s15, [#allocation3]  }
  0x15   :  { %s658_s22 = smov [#allocation6]  }
  0x16   :  { %s36_s23 = sshll.u32 %s658_s22, 4  ;;  %s37_s23 = int_to_ptr.vmem [resolvable:$true] %s36_s23 }
  0x17   :  { %s640_s24 = scalar_lea.vmem %s37_s23, 256  ;;  %p645_p11 = scmp.lt.s32.totalorder %s37_s23, %s37_s23 }
  0x18   :  { %p641_p10 = scmp.ne.s32.totalorder %s37_s23, %s640_s24  ;;  %p646_p12 = scmp.lt.s32.totalorder %s640_s24, %s640_s24 }
  0x1a   :  { %p647_p13 = por %p646_p12, %p645_p11 }
  0x1c   :  { %p648_p0 = pnand %p647_p13, %p641_p10 }
  0x1e   :  { %651 = shalt.err (!%p648_p0)
}
  0x1f   :  { %39 = dma.hbm_to_vmem [thread:$0]  %s694_s2, 256, %s37_s23, [#allocation5]  }
  0x20   :  { %652 = dma.done.wait [#allocation3], 256  }
  0x21   :  { %653 = vsyncadd [#allocation3], 4294967040 }
  0x22   :  { %654 = dma.done.wait [#allocation5], 384  }
  0x23   :  { %655 = vsyncadd [#allocation5], 4294966912  ;;  %v659_v0 = vmov 0.0   ;;  %vm54_vm0 = vcmask 64512   ;;  %v53_v1 = vld [vmem:[#allocation6 + $0x8] sm:$0xff]  ;;  %v52_v2 = vld [vmem:[#allocation6] sm:$0xff] }
  0x24   :  { %124 = vmatprep.mubr.f32.mxu0 %v659_v0  ;;  %210 = vmatprep.mubr.f32.mxu1 %v659_v0  ;;  %v51_v3 = vld [vmem:[#allocation4] sm:$0xff]  ;;  %v88_v4 = vand.u32 4294901760, %v53_v1  ;;  %v90_v5 = vand.u32 4294901760, %v52_v2  ;;  %v49_v46 = vld [vmem:[#allocation2] sm:$0xff]  ;;  %v50_v47 = vld [vmem:[#allocation2 + $0x8] sm:$0xff]  ;;  %vm566_vm3 = vcmask 7168  }
  0x25   :  { %v56_v6 = vsel %vm54_vm0, %v51_v3, 0  ;;  %v552_v49 = vadd.f32 %v50_v47, %v49_v46  ;;  %vm530_vm1 = vcmp.gt.f32.partialorder %v49_v46, 0.0  ;;  %vm531_vm2 = vcmp.gt.f32.partialorder %v50_v47, 0.0 }
  0x26   :  { %v125_v7 = vand.u32 4294901760, %v56_v6  ;;  %89 = vmatprep.subr.mxu0 %v88_v4  ;;  %v167_v8 = vsub.f32 %v53_v1, %v88_v4  ;;  %v173_v9 = vsub.f32 %v52_v2, %v90_v5  ;;  %v532_v50 = vsel %vm530_vm1, %v49_v46, 1.0 }
  0x27   :  { %91 = vmatpush1.msra.mxu0 %v90_v5  ;;  %v533_v51 = vsel %vm531_vm2, %v50_v47, 1.0 }
  0x28   :  { %v126_v10 = vsub.f32 %v56_v6, %v125_v7  ;;  %v168_v11 = vand.u32 4294901760, %v167_v8  ;;  %250 = vmatprep.subr.mxu0 %v167_v8  ;;  %v174_v12 = vand.u32 4294901760, %v173_v9 }
  0x2a   :  { %v127_v13 = vand.u32 4294901760, %v126_v10  ;;  %v169_v14 = vsub.f32 %v167_v8, %v168_v11  ;;  %v175_v15 = vsub.f32 %v173_v9, %v174_v12 }
  0x2c   :  { %v128_v16 = vsub.f32 %v126_v10, %v127_v13  ;;  %v170_v17 = vand.u32 4294901760, %v169_v14  ;;  %v176_v18 = vand.u32 4294901760, %v175_v15 }
  0x2e   :  { %v129_v19 = vand.u32 4294901760, %v128_v16  ;;  %171 = vmatprep.subr.mxu1 %v170_v17 }
  0x2f   :  { %177 = vmatpush1.msra.mxu1 %v176_v18 }
  0x30   :  { %130 = vmatmul.mubr.f32.vlgmr.msra.gmra.mxu0 %v129_v19  ;;  %212 = vmatmul.mubr.f32.vlgmr.msra.gmra.mxu1 %v125_v7 }
  0x31   :  { %253 = vmatpush1.msra.mxu0 %v173_v9  ;;  %326 = vmatprep.subr.mxu1 %v88_v4 }
  0x32   :  { %286 = vmatprep.mubr.f32.mxu0 %v659_v0  ;;  %328 = vmatpush1.msra.mxu1 %v90_v5 }
  0x33   :  { %404 = vmatprep.subr.mxu0 %v168_v11  ;;  %361 = vmatprep.mubr.f32.mxu1 %v659_v0 }
  0x34   :  { %289 = vmatmul.mubr.f32.vlgmr.msra.gmra.mxu0 %v126_v10  ;;  %365 = vmatmul.mubr.f32.vlgmr.msra.gmra.mxu1 %v127_v13 }
  0x35   :  { %408 = vmatpush1.msra.mxu0 %v174_v12  ;;  %480 = vmatprep.subr.mxu1 %v88_v4 }
  0x36   :  { %441 = vmatprep.mubr.f32.mxu0 %v659_v0  ;;  %482 = vmatpush1.msra.mxu1 %v90_v5 }
  0x37   :  { %515 = vmatprep.mubr.f32.mxu1 %v659_v0 }
  0x38   :  { %443 = vmatmul.mubr.f32.vlgmr.msra.gmra.mxu0 %v125_v7  ;;  %517 = vmatmul.mubr.f32.vlgmr.msra.gmra.mxu1 %v125_v7 }
  0xf0   :  { %v131_v20 = vpop.f32.mrf.mxu0  ;;  %v213_v21 = vpop.f32.mrf.mxu1 }
  0xf1   :  { %v214_v22 = vadd.f32 %v213_v21, %v131_v20 }
  0xf2   :  { %v133_v23 = vpop.f32.mrf.mxu0  ;;  %v215_v24 = vpop.f32.mrf.mxu1 }
  0xf3   :  { %v216_v25 = vadd.f32 %v215_v24, %v133_v23 }
  0xf4   :  { %v290_v26 = vpop.f32.mrf.mxu0  ;;  %v366_v28 = vpop.f32.mrf.mxu1 }
  0xf5   :  { %v291_v27 = vadd.f32 %v290_v26, %v214_v22 }
  0xf6   :  { %v292_v29 = vpop.f32.mrf.mxu0  ;;  %v368_v32 = vpop.f32.mrf.mxu1 }
  0xf7   :  { %v367_v30 = vadd.f32 %v366_v28, %v291_v27  ;;  %v293_v31 = vadd.f32 %v292_v29, %v216_v25 }
  0xf8   :  { %v444_v33 = vpop.f32.mrf.mxu0  ;;  %v518_v36 = vpop.f32.mrf.mxu1 }
  0xf9   :  { %v369_v34 = vadd.f32 %v368_v32, %v293_v31  ;;  %v445_v35 = vadd.f32 %v444_v33, %v367_v30 }
  0xfa   :  { %v446_v37 = vpop.f32.mrf.mxu0  ;;  %v520_v40 = vpop.f32.mrf.mxu1 }
  0xfb   :  { %v519_v38 = vadd.f32 %v518_v36, %v445_v35  ;;  %v447_v39 = vadd.f32 %v446_v37, %v369_v34 }
  0xfd   :  { %v523_v41 = vmul.f32 1.442695, %v519_v38  ;;  %v521_v42 = vadd.f32 %v520_v40, %v447_v39 }
  0xff   :  { %v525_v43 = vmul.f32 1.442695, %v521_v42  ;;  %578 = vpow2.f32 %v523_v41 }
 0x101   :  { %580 = vpow2.f32 %v525_v43 }
 0x102   :  { %582 = vlog2.f32 %v532_v50 }
 0x103   :  { %584 = vlog2.f32 %v533_v51 }
 0x10c   :  { %v579_v44 = vpop.eup %578 }
 0x10e   :  { %v581_v45 = vpop.eup %580 }
 0x10f   :  { %v527_v48 = vadd.f32 %v581_v45, %v579_v44  ;;  %v583_v56 = vpop.eup %582 }
 0x110   :  { %v585_v57 = vpop.eup %584  ;;  %v535_v58 = vmul.f32 0.6931472, %v583_v56 }
 0x111   :  { %528 = vadd.xlane.f32.xlu0 %v527_v48  ;;  %v537_v60 = vmul.f32 0.6931472, %v585_v57 }
 0x115   :  { %553 = vadd.xlane.f32.xlu0 %v552_v49 }
 0x19a   :  { %v529_v52 = vpop.xlane.xlu0 %528 }
 0x19b   :  { %v538_v53 = vmul.f32 1e-08, %v529_v52 }
 0x19d   :  { %v539_v54 = vadd.f32 %v579_v44, %v538_v53  ;;  %v540_v55 = vadd.f32 %v581_v45, %v538_v53 }
 0x19e   :  { %v554_v7 = vpop.xlane.xlu0 %553 }
 0x19f   :  { %586 = vlog2.f32 %v539_v54 }
 0x1a0   :  { %588 = vlog2.f32 %v540_v55 }
 0x1a1   :  { %590 = vlog2.f32 %v529_v52 }
 0x1ac   :  { %v587_v59 = vpop.eup %586 }
 0x1ad   :  { %v589_v61 = vpop.eup %588  ;;  %v542_v62 = vmul.f32 0.6931472, %v587_v59 }
 0x1ae   :  { %v544_v63 = vmul.f32 0.6931472, %v589_v61  ;;  %v591_v5 = vpop.eup %590 }
 0x1af   :  { %v545_v0 = vsub.f32 %v535_v58, %v542_v62  ;;  %v556_v6 = vmul.f32 0.6931472, %v591_v5 }
 0x1b0   :  { %v546_v1 = vsub.f32 %v537_v60, %v544_v63 }
 0x1b1   :  { %v547_v2 = vmul.f32 %v545_v0, %v49_v46  ;;  %v557_v8 = vmul.f32 %v556_v6, %v554_v7 }
 0x1b2   :  { %v548_v3 = vmul.f32 %v546_v1, %v50_v47 }
 0x1b4   :  { %v549_v4 = vadd.f32 %v548_v3, %v547_v2 }
 0x1b6   :  { %550 = vadd.xlane.f32.xlu1 %v549_v4 }
 0x23f   :  { %v551_v9 = vpop.xlane.xlu1 %550 }
 0x240   :  { %v558_v10 = vadd.f32 %v557_v8, %v551_v9 }
 0x242   :  { %567 = vst.msk [vmem:[%s695_s3] sm:$0xff] %vm566_vm3, %v558_v10 }
 0x243   :  { %572 = vsyncpa [#allocation3], 1 }
 0x244   :  { %573 = vsyncpa [#allocation5], 1 }

</bundles_post_ra>
